<compile_context>
chip_gen: v6e
topology: v6e:2x2x1
jax: 0.10.0
libtpu: 0.0.40
codegen_flags: <defaults>
</compile_context>

<pallas_src>
import math
import functools

import jax
import jax.numpy as jnp
from jax.experimental import pallas as pl
from jax.experimental.pallas import tpu as pltpu


def _encoder_layer_kernel(x_ref, mask_ref,
                          ln1a_ref, ln1b_ref,
                          wqkv_ref, bqkv_ref,
                          wo_ref, bo_ref,
                          ln2a_ref, ln2b_ref,
                          w1_ref, b1_ref, w2_ref, b2_ref,
                          o_ref,
                          ctx_ref,
                          *, eps, scale, num_heads, head_dim):
    bf16 = jnp.bfloat16
    x = x_ref[0]                                   # (S, D) f32, loaded once
    D = x.shape[-1]
    H, dk = num_heads, head_dim

    def layernorm(v, a, b):
        mean = jnp.mean(v, axis=-1, keepdims=True)
        # torch.Tensor.std is unbiased (ddof = 1); module divides by (std + eps)
        var = jnp.sum((v - mean) ** 2, axis=-1, keepdims=True) / (D - 1)
        inv = pl.reciprocal(jnp.sqrt(var) + eps, approx=True)   # EUP slot
        return a * (v - mean) * inv + b

    # ---- LN1 + fused QKV projection: one full-width/full-depth MXU op ----
    xn = layernorm(x, ln1a_ref[...], ln1b_ref[...]).astype(bf16)       # (S, D)
    qkv = jnp.dot(xn, wqkv_ref[...],
                  preferred_element_type=jnp.float32) + bqkv_ref[...]  # (S, 3D) f32

    # additive mask bias, broadcast over heads and query positions
    bias = jnp.where(mask_ref[0] == 0.0,
                     jnp.float32(-1e9), jnp.float32(0.0))              # (1, S)

    # ---- per-head attention (static unroll: all slices/stores are static) ----
    for h in range(H):
        lo = h * dk
        q = qkv[:, lo:lo + dk]
        k = qkv[:, D + lo:D + lo + dk]
        v = qkv[:, 2 * D + lo:2 * D + lo + dk]
        # q @ k^T with the transpose folded into dot_general
        s = jax.lax.dot_general(
            q.astype(bf16), k.astype(bf16),
            dimension_numbers=(((1,), (1,)), ((), ())),
            preferred_element_type=jnp.float32) * scale                # (S, S) f32
        s = s + bias
        s = s - jnp.max(s, axis=-1, keepdims=True)
        e = jnp.exp(s)
        p = e * pl.reciprocal(jnp.sum(e, axis=-1, keepdims=True), approx=True)
        ctx_h = jnp.dot(p.astype(bf16), v.astype(bf16),
                        preferred_element_type=jnp.float32)            # (S, dk)
        ctx_ref[:, lo:lo + dk] = ctx_h.astype(ctx_ref.dtype)           # static cols

    # ---- single full-depth output projection over the concatenated heads ----
    attn = jnp.dot(ctx_ref[...], wo_ref[...],
                   preferred_element_type=jnp.float32) + bo_ref[...]
    x1 = x + attn                                   # residual (dropout = identity)

    # ---- LN2 + FFN + residual ----
    xn2 = layernorm(x1, ln2a_ref[...], ln2b_ref[...]).astype(bf16)
    h1 = jnp.dot(xn2, w1_ref[...],
                 preferred_element_type=jnp.float32) + b1_ref[...]
    h1 = jnp.maximum(h1, 0.0)
    ffn = jnp.dot(h1.astype(bf16), w2_ref[...],
                  preferred_element_type=jnp.float32) + b2_ref[...]
    o_ref[0] = (x1 + ffn).astype(o_ref.dtype)


def encoder_layer(x, mask, params, *, num_heads, eps=1e-6):
    B, S, D = x.shape
    Dff = params["w1"].shape[1]
    H = num_heads
    dk = D // H
    bf16 = jnp.bfloat16

    # One-time (outside-kernel) parameter re-layout:
    #  * Q/K/V weights fused column-wise into one (D, 3D) bf16 matrix,
    #    biases fused into one lane-dense (1, 3D) f32 row.
    #  * all other 1-D biases / LN params made lane-dense 2-D.
    wqkv = jnp.concatenate(
        [params["wq"], params["wk"], params["wv"]], axis=1).astype(bf16)   # (D, 3D)
    bqkv = jnp.concatenate(
        [params["bq"], params["bk"], params["bv"]]).reshape(1, 3 * D)      # (1, 3D)
    wo = params["wo"].astype(bf16)
    bo = params["bo"].reshape(1, D)
    ln1a = params["ln1_a"].reshape(1, D)
    ln1b = params["ln1_b"].reshape(1, D)
    ln2a = params["ln2_a"].reshape(1, D)
    ln2b = params["ln2_b"].reshape(1, D)
    w1 = params["w1"].astype(bf16)
    b1 = params["b1"].reshape(1, Dff)
    w2 = params["w2"].astype(bf16)
    b2 = params["b2"].reshape(1, D)

    kernel = functools.partial(_encoder_layer_kernel,
                               eps=eps, scale=1.0 / math.sqrt(dk),
                               num_heads=H, head_dim=dk)

    def const_spec(shape):            # grid-invariant operand (DMA'd once)
        return pl.BlockSpec(shape, lambda b: (0, 0))

    in_specs = [
        pl.BlockSpec((1, S, D), lambda b: (b, 0, 0)),      # x
        pl.BlockSpec((1, 1, S), lambda b: (b, 0, 0)),      # mask
        const_spec((1, D)), const_spec((1, D)),            # ln1 a, b
        const_spec((D, 3 * D)), const_spec((1, 3 * D)),    # wqkv, bqkv
        const_spec((D, D)), const_spec((1, D)),            # wo, bo
        const_spec((1, D)), const_spec((1, D)),            # ln2 a, b
        const_spec((D, Dff)), const_spec((1, Dff)),        # w1, b1
        const_spec((Dff, D)), const_spec((1, D)),          # w2, b2
    ]

    return pl.pallas_call(
        kernel,
        out_shape=jax.ShapeDtypeStruct((B, S, D), jnp.float32),
        grid_spec=pltpu.PrefetchScalarGridSpec(
            num_scalar_prefetch=0,
            grid=(B,),
            in_specs=in_specs,
            out_specs=pl.BlockSpec((1, S, D), lambda b: (b, 0, 0)),
            scratch_shapes=[
                pltpu.VMEM((S, D), bf16),      # concatenated per-head contexts
            ],
        ),
        compiler_params=pltpu.CompilerParams(
            dimension_semantics=("parallel",)),
    )(x, mask, ln1a, ln1b, wqkv, bqkv, wo, bo, ln2a, ln2b, w1, b1, w2, b2)


def init_params(key, d_model, d_ff):
    ks = jax.random.split(key, 12)
    scale = 0.02
    return {
        "ln1_a": jnp.ones((d_model,), jnp.float32),
        "ln1_b": jnp.zeros((d_model,), jnp.float32),
        "ln2_a": jnp.ones((d_model,), jnp.float32),
        "ln2_b": jnp.zeros((d_model,), jnp.float32),
        "wq": scale * jax.random.normal(ks[0], (d_model, d_model), jnp.float32),
        "bq": scale * jax.random.normal(ks[1], (d_model,), jnp.float32),
        "wk": scale * jax.random.normal(ks[2], (d_model, d_model), jnp.float32),
        "bk": scale * jax.random.normal(ks[3], (d_model,), jnp.float32),
        "wv": scale * jax.random.normal(ks[4], (d_model, d_model), jnp.float32),
        "bv": scale * jax.random.normal(ks[5], (d_model,), jnp.float32),
        "wo": scale * jax.random.normal(ks[6], (d_model, d_model), jnp.float32),
        "bo": scale * jax.random.normal(ks[7], (d_model,), jnp.float32),
        "w1": scale * jax.random.normal(ks[8], (d_model, d_ff), jnp.float32),
        "b1": scale * jax.random.normal(ks[9], (d_ff,), jnp.float32),
        "w2": scale * jax.random.normal(ks[10], (d_ff, d_model), jnp.float32),
        "b2": scale * jax.random.normal(ks[11], (d_model,), jnp.float32),
    }


if __name__ == "__main__":
    B, S, D, H, DFF = 2, 8, 32, 4, 64
    key = jax.random.PRNGKey(0)
    kx, kp = jax.random.split(key)

    x = jax.random.normal(kx, (B, S, D), jnp.float32)
    # mask: 1 = attend, 0 = masked; mask out the last 2 keys of batch 1.
    mask = jnp.ones((B, 1, S), jnp.float32)
    mask = mask.at[1, 0, S - 2:].set(0.0)

    params = init_params(kp, D, DFF)

    out = encoder_layer(x, mask, params, num_heads=H)
    out = jax.block_until_ready(out)
    assert out.shape == (B, S, D)
    assert jnp.all(jnp.isfinite(out))
    print("KERNEL_OK")
</pallas_src>

<mosaic_0001>
module attributes {stable_mosaic.version = 11 : i64} {
  func.func @_encoder_layer_kernel(%arg0: i32, %arg1: memref<1x8x32xf32, #tpu.memory_space<vmem>>, %arg2: memref<1x1x8xf32, #tpu.memory_space<vmem>>, %arg3: memref<1x32xf32, #tpu.memory_space<vmem>>, %arg4: memref<1x32xf32, #tpu.memory_space<vmem>>, %arg5: memref<32x96xbf16, #tpu.memory_space<vmem>>, %arg6: memref<1x96xf32, #tpu.memory_space<vmem>>, %arg7: memref<32x32xbf16, #tpu.memory_space<vmem>>, %arg8: memref<1x32xf32, #tpu.memory_space<vmem>>, %arg9: memref<1x32xf32, #tpu.memory_space<vmem>>, %arg10: memref<1x32xf32, #tpu.memory_space<vmem>>, %arg11: memref<32x64xbf16, #tpu.memory_space<vmem>>, %arg12: memref<1x64xf32, #tpu.memory_space<vmem>>, %arg13: memref<64x32xbf16, #tpu.memory_space<vmem>>, %arg14: memref<1x32xf32, #tpu.memory_space<vmem>>, %arg15: memref<1x8x32xf32, #tpu.memory_space<vmem>>, %arg16: memref<8x32xbf16, #tpu.memory_space<vmem>>) attributes {dimension_semantics = [#tpu.dimension_semantics<parallel>], iteration_bounds = array<i64: 2>, scalar_prefetch = 0 : i64, scratch_operands = 1 : i64, tpu.core_type = #tpu.core_type<tc>, window_params = [{transform_indices = @transform_0, window_bounds = array<i64: 1, 8, 32>}, {transform_indices = @transform_1, window_bounds = array<i64: 1, 1, 8>}, {pipeline_mode = #tpu.pipeline_mode<synchronous>, transform_indices = @transform_2, window_bounds = array<i64: 1, 32>}, {pipeline_mode = #tpu.pipeline_mode<synchronous>, transform_indices = @transform_3, window_bounds = array<i64: 1, 32>}, {pipeline_mode = #tpu.pipeline_mode<synchronous>, transform_indices = @transform_4, window_bounds = array<i64: 32, 96>}, {pipeline_mode = #tpu.pipeline_mode<synchronous>, transform_indices = @transform_5, window_bounds = array<i64: 1, 96>}, {pipeline_mode = #tpu.pipeline_mode<synchronous>, transform_indices = @transform_6, window_bounds = array<i64: 32, 32>}, {pipeline_mode = #tpu.pipeline_mode<synchronous>, transform_indices = @transform_7, window_bounds = array<i64: 1, 32>}, {pipeline_mode = #tpu.pipeline_mode<synchronous>, transform_indices = @transform_8, window_bounds = array<i64: 1, 32>}, {pipeline_mode = #tpu.pipeline_mode<synchronous>, transform_indices = @transform_9, window_bounds = array<i64: 1, 32>}, {pipeline_mode = #tpu.pipeline_mode<synchronous>, transform_indices = @transform_10, window_bounds = array<i64: 32, 64>}, {pipeline_mode = #tpu.pipeline_mode<synchronous>, transform_indices = @transform_11, window_bounds = array<i64: 1, 64>}, {pipeline_mode = #tpu.pipeline_mode<synchronous>, transform_indices = @transform_12, window_bounds = array<i64: 64, 32>}, {pipeline_mode = #tpu.pipeline_mode<synchronous>, transform_indices = @transform_13, window_bounds = array<i64: 1, 32>}, {transform_indices = @transform_14, window_bounds = array<i64: 1, 8, 32>}]} {
    %c0 = arith.constant 0 : index
    %c0_0 = arith.constant 0 : index
    %c0_1 = arith.constant 0 : index
    %0 = vector.load %arg1[%c0, %c0_0, %c0_1] : memref<1x8x32xf32, #tpu.memory_space<vmem>>, vector<1x8x32xf32>
    %1 = vector.shape_cast %0 : vector<1x8x32xf32> to vector<8x32xf32>
    %c0_2 = arith.constant 0 : index
    %c0_3 = arith.constant 0 : index
    %2 = vector.load %arg3[%c0_2, %c0_3] : memref<1x32xf32, #tpu.memory_space<vmem>>, vector<1x32xf32>
    %c0_4 = arith.constant 0 : index
    %c0_5 = arith.constant 0 : index
    %3 = vector.load %arg4[%c0_4, %c0_5] : memref<1x32xf32, #tpu.memory_space<vmem>>, vector<1x32xf32>
    %cst = arith.constant dense<0.000000e+00> : vector<8xf32>
    %4 = vector.multi_reduction <add>, %1, %cst [1] : vector<8x32xf32> to vector<8xf32>
    %5 = vector.shape_cast %4 : vector<8xf32> to vector<8x1xf32>
    %cst_6 = arith.constant 3.200000e+01 : f32
    %6 = vector.broadcast %cst_6 : f32 to vector<8x1xf32>
    %7 = arith.divf %5, %6 : vector<8x1xf32>
    %8 = vector.broadcast %7 : vector<8x1xf32> to vector<8x32xf32>
    %9 = arith.subf %1, %8 : vector<8x32xf32>
    %10 = arith.mulf %9, %9 : vector<8x32xf32>
    %cst_7 = arith.constant dense<0.000000e+00> : vector<8xf32>
    %11 = vector.multi_reduction <add>, %10, %cst_7 [1] : vector<8x32xf32> to vector<8xf32>
    %12 = vector.shape_cast %11 : vector<8xf32> to vector<8x1xf32>
    %cst_8 = arith.constant 3.100000e+01 : f32
    %13 = vector.broadcast %cst_8 : f32 to vector<8x1xf32>
    %14 = arith.divf %12, %13 : vector<8x1xf32>
    %15 = math.sqrt %14 : vector<8x1xf32>
    %cst_9 = arith.constant 9.99999997E-7 : f32
    %16 = vector.broadcast %cst_9 : f32 to vector<8x1xf32>
    %17 = arith.addf %15, %16 : vector<8x1xf32>
    %18 = tpu.reciprocal %17 {approx = true} : vector<8x1xf32> -> vector<8x1xf32>
    %19 = vector.broadcast %7 : vector<8x1xf32> to vector<8x32xf32>
    %20 = arith.subf %1, %19 : vector<8x32xf32>
    %21 = vector.broadcast %2 : vector<1x32xf32> to vector<8x32xf32>
    %22 = arith.mulf %21, %20 : vector<8x32xf32>
    %23 = vector.broadcast %18 : vector<8x1xf32> to vector<8x32xf32>
    %24 = arith.mulf %22, %23 : vector<8x32xf32>
    %25 = vector.broadcast %3 : vector<1x32xf32> to vector<8x32xf32>
    %26 = arith.addf %24, %25 : vector<8x32xf32>
    %27 = arith.truncf %26 : vector<8x32xf32> to vector<8x32xbf16>
    %c0_10 = arith.constant 0 : index
    %c0_11 = arith.constant 0 : index
    %28 = vector.load %arg5[%c0_10, %c0_11] : memref<32x96xbf16, #tpu.memory_space<vmem>>, vector<32x96xbf16>
    %cst_12 = arith.constant dense<0.000000e+00> : vector<8x96xf32>
    %29 = tpu.matmul %27, %28, %cst_12 {dimension_numbers = #tpu.dot_dimension_numbers<[1], [0], [0], [1], [0, 0, 1, 1], [], []>} : vector<8x32xbf16>, vector<32x96xbf16>, vector<8x96xf32> -> vector<8x96xf32>
    %c0_13 = arith.constant 0 : index
    %c0_14 = arith.constant 0 : index
    %30 = vector.load %arg6[%c0_13, %c0_14] : memref<1x96xf32, #tpu.memory_space<vmem>>, vector<1x96xf32>
    %31 = vector.broadcast %30 : vector<1x96xf32> to vector<8x96xf32>
    %32 = arith.addf %29, %31 : vector<8x96xf32>
    %c0_15 = arith.constant 0 : index
    %c0_16 = arith.constant 0 : index
    %c0_17 = arith.constant 0 : index
    %33 = vector.load %arg2[%c0_15, %c0_16, %c0_17] : memref<1x1x8xf32, #tpu.memory_space<vmem>>, vector<1x1x8xf32>
    %34 = vector.shape_cast %33 : vector<1x1x8xf32> to vector<1x8xf32>
    %cst_18 = arith.constant 0.000000e+00 : f32
    %35 = vector.broadcast %cst_18 : f32 to vector<1x8xf32>
    %36 = arith.cmpf oeq, %34, %35 : vector<1x8xf32>
    %cst_19 = arith.constant -1.000000e+09 : f32
    %cst_20 = arith.constant 0.000000e+00 : f32
    %37 = vector.broadcast %cst_19 : f32 to vector<1x8xf32>
    %38 = vector.broadcast %cst_20 : f32 to vector<1x8xf32>
    %39 = arith.select %36, %37, %38 : vector<1x8xi1>, vector<1x8xf32>
    %40 = vector.extract_strided_slice %32 {offsets = [0, 0], sizes = [8, 8], strides = [1, 1]} : vector<8x96xf32> to vector<8x8xf32>
    %41 = vector.extract_strided_slice %32 {offsets = [0, 32], sizes = [8, 8], strides = [1, 1]} : vector<8x96xf32> to vector<8x8xf32>
    %42 = vector.extract_strided_slice %32 {offsets = [0, 64], sizes = [8, 8], strides = [1, 1]} : vector<8x96xf32> to vector<8x8xf32>
    %43 = arith.truncf %40 : vector<8x8xf32> to vector<8x8xbf16>
    %44 = arith.truncf %41 : vector<8x8xf32> to vector<8x8xbf16>
    %cst_21 = arith.constant dense<0.000000e+00> : vector<8x8xf32>
    %45 = tpu.matmul %43, %44, %cst_21 {dimension_numbers = #tpu.dot_dimension_numbers<[1], [1], [0], [0], [0, 0, 1, 0], [], []>} : vector<8x8xbf16>, vector<8x8xbf16>, vector<8x8xf32> -> vector<8x8xf32>
    %cst_22 = arith.constant 0.353553385 : f32
    %46 = vector.broadcast %cst_22 : f32 to vector<8x8xf32>
    %47 = arith.mulf %45, %46 : vector<8x8xf32>
    %48 = vector.broadcast %39 : vector<1x8xf32> to vector<8x8xf32>
    %49 = arith.addf %47, %48 : vector<8x8xf32>
    %cst_23 = arith.constant dense<0xFF800000> : vector<8xf32>
    %50 = vector.multi_reduction <maximumf>, %49, %cst_23 [1] : vector<8x8xf32> to vector<8xf32>
    %51 = vector.shape_cast %50 : vector<8xf32> to vector<8x1xf32>
    %52 = vector.broadcast %51 : vector<8x1xf32> to vector<8x8xf32>
    %53 = arith.subf %49, %52 : vector<8x8xf32>
    %54 = math.exp %53 : vector<8x8xf32>
    %cst_24 = arith.constant dense<0.000000e+00> : vector<8xf32>
    %55 = vector.multi_reduction <add>, %54, %cst_24 [1] : vector<8x8xf32> to vector<8xf32>
    %56 = vector.shape_cast %55 : vector<8xf32> to vector<8x1xf32>
    %57 = tpu.reciprocal %56 {approx = true} : vector<8x1xf32> -> vector<8x1xf32>
    %58 = vector.broadcast %57 : vector<8x1xf32> to vector<8x8xf32>
    %59 = arith.mulf %54, %58 : vector<8x8xf32>
    %60 = arith.truncf %59 : vector<8x8xf32> to vector<8x8xbf16>
    %61 = arith.truncf %42 : vector<8x8xf32> to vector<8x8xbf16>
    %cst_25 = arith.constant dense<0.000000e+00> : vector<8x8xf32>
    %62 = tpu.matmul %60, %61, %cst_25 {dimension_numbers = #tpu.dot_dimension_numbers<[1], [0], [0], [1], [0, 0, 1, 1], [], []>} : vector<8x8xbf16>, vector<8x8xbf16>, vector<8x8xf32> -> vector<8x8xf32>
    %63 = arith.truncf %62 : vector<8x8xf32> to vector<8x8xbf16>
    %c0_26 = arith.constant 0 : index
    %c0_27 = arith.constant 0 : index
    %64 = vector.load %arg16[%c0_26, %c0_27] : memref<8x32xbf16, #tpu.memory_space<vmem>>, vector<8x8xbf16>
    tpu.vector_store %arg16[%c0_26, %c0_27], %63 {strides = array<i32>} : memref<8x32xbf16, #tpu.memory_space<vmem>>, vector<8x8xbf16>,
    %65 = vector.extract_strided_slice %32 {offsets = [0, 8], sizes = [8, 8], strides = [1, 1]} : vector<8x96xf32> to vector<8x8xf32>
    %66 = vector.extract_strided_slice %32 {offsets = [0, 40], sizes = [8, 8], strides = [1, 1]} : vector<8x96xf32> to vector<8x8xf32>
    %67 = vector.extract_strided_slice %32 {offsets = [0, 72], sizes = [8, 8], strides = [1, 1]} : vector<8x96xf32> to vector<8x8xf32>
    %68 = arith.truncf %65 : vector<8x8xf32> to vector<8x8xbf16>
    %69 = arith.truncf %66 : vector<8x8xf32> to vector<8x8xbf16>
    %cst_28 = arith.constant dense<0.000000e+00> : vector<8x8xf32>
    %70 = tpu.matmul %68, %69, %cst_28 {dimension_numbers = #tpu.dot_dimension_numbers<[1], [1], [0], [0], [0, 0, 1, 0], [], []>} : vector<8x8xbf16>, vector<8x8xbf16>, vector<8x8xf32> -> vector<8x8xf32>
    %cst_29 = arith.constant 0.353553385 : f32
    %71 = vector.broadcast %cst_29 : f32 to vector<8x8xf32>
    %72 = arith.mulf %70, %71 : vector<8x8xf32>
    %73 = vector.broadcast %39 : vector<1x8xf32> to vector<8x8xf32>
    %74 = arith.addf %72, %73 : vector<8x8xf32>
    %cst_30 = arith.constant dense<0xFF800000> : vector<8xf32>
    %75 = vector.multi_reduction <maximumf>, %74, %cst_30 [1] : vector<8x8xf32> to vector<8xf32>
    %76 = vector.shape_cast %75 : vector<8xf32> to vector<8x1xf32>
    %77 = vector.broadcast %76 : vector<8x1xf32> to vector<8x8xf32>
    %78 = arith.subf %74, %77 : vector<8x8xf32>
    %79 = math.exp %78 : vector<8x8xf32>
    %cst_31 = arith.constant dense<0.000000e+00> : vector<8xf32>
    %80 = vector.multi_reduction <add>, %79, %cst_31 [1] : vector<8x8xf32> to vector<8xf32>
    %81 = vector.shape_cast %80 : vector<8xf32> to vector<8x1xf32>
    %82 = tpu.reciprocal %81 {approx = true} : vector<8x1xf32> -> vector<8x1xf32>
    %83 = vector.broadcast %82 : vector<8x1xf32> to vector<8x8xf32>
    %84 = arith.mulf %79, %83 : vector<8x8xf32>
    %85 = arith.truncf %84 : vector<8x8xf32> to vector<8x8xbf16>
    %86 = arith.truncf %67 : vector<8x8xf32> to vector<8x8xbf16>
    %cst_32 = arith.constant dense<0.000000e+00> : vector<8x8xf32>
    %87 = tpu.matmul %85, %86, %cst_32 {dimension_numbers = #tpu.dot_dimension_numbers<[1], [0], [0], [1], [0, 0, 1, 1], [], []>} : vector<8x8xbf16>, vector<8x8xbf16>, vector<8x8xf32> -> vector<8x8xf32>
    %88 = arith.truncf %87 : vector<8x8xf32> to vector<8x8xbf16>
    %c0_33 = arith.constant 0 : index
    %c8 = arith.constant 8 : index
    %89 = vector.load %arg16[%c0_33, %c8] : memref<8x32xbf16, #tpu.memory_space<vmem>>, vector<8x8xbf16>
    tpu.vector_store %arg16[%c0_33, %c8], %88 {strides = array<i32>} : memref<8x32xbf16, #tpu.memory_space<vmem>>, vector<8x8xbf16>,
    %90 = vector.extract_strided_slice %32 {offsets = [0, 16], sizes = [8, 8], strides = [1, 1]} : vector<8x96xf32> to vector<8x8xf32>
    %91 = vector.extract_strided_slice %32 {offsets = [0, 48], sizes = [8, 8], strides = [1, 1]} : vector<8x96xf32> to vector<8x8xf32>
    %92 = vector.extract_strided_slice %32 {offsets = [0, 80], sizes = [8, 8], strides = [1, 1]} : vector<8x96xf32> to vector<8x8xf32>
    %93 = arith.truncf %90 : vector<8x8xf32> to vector<8x8xbf16>
    %94 = arith.truncf %91 : vector<8x8xf32> to vector<8x8xbf16>
    %cst_34 = arith.constant dense<0.000000e+00> : vector<8x8xf32>
    %95 = tpu.matmul %93, %94, %cst_34 {dimension_numbers = #tpu.dot_dimension_numbers<[1], [1], [0], [0], [0, 0, 1, 0], [], []>} : vector<8x8xbf16>, vector<8x8xbf16>, vector<8x8xf32> -> vector<8x8xf32>
    %cst_35 = arith.constant 0.353553385 : f32
    %96 = vector.broadcast %cst_35 : f32 to vector<8x8xf32>
    %97 = arith.mulf %95, %96 : vector<8x8xf32>
    %98 = vector.broadcast %39 : vector<1x8xf32> to vector<8x8xf32>
    %99 = arith.addf %97, %98 : vector<8x8xf32>
    %cst_36 = arith.constant dense<0xFF800000> : vector<8xf32>
    %100 = vector.multi_reduction <maximumf>, %99, %cst_36 [1] : vector<8x8xf32> to vector<8xf32>
    %101 = vector.shape_cast %100 : vector<8xf32> to vector<8x1xf32>
    %102 = vector.broadcast %101 : vector<8x1xf32> to vector<8x8xf32>
    %103 = arith.subf %99, %102 : vector<8x8xf32>
    %104 = math.exp %103 : vector<8x8xf32>
    %cst_37 = arith.constant dense<0.000000e+00> : vector<8xf32>
    %105 = vector.multi_reduction <add>, %104, %cst_37 [1] : vector<8x8xf32> to vector<8xf32>
    %106 = vector.shape_cast %105 : vector<8xf32> to vector<8x1xf32>
    %107 = tpu.reciprocal %106 {approx = true} : vector<8x1xf32> -> vector<8x1xf32>
    %108 = vector.broadcast %107 : vector<8x1xf32> to vector<8x8xf32>
    %109 = arith.mulf %104, %108 : vector<8x8xf32>
    %110 = arith.truncf %109 : vector<8x8xf32> to vector<8x8xbf16>
    %111 = arith.truncf %92 : vector<8x8xf32> to vector<8x8xbf16>
    %cst_38 = arith.constant dense<0.000000e+00> : vector<8x8xf32>
    %112 = tpu.matmul %110, %111, %cst_38 {dimension_numbers = #tpu.dot_dimension_numbers<[1], [0], [0], [1], [0, 0, 1, 1], [], []>} : vector<8x8xbf16>, vector<8x8xbf16>, vector<8x8xf32> -> vector<8x8xf32>
    %113 = arith.truncf %112 : vector<8x8xf32> to vector<8x8xbf16>
    %c0_39 = arith.constant 0 : index
    %c16 = arith.constant 16 : index
    %114 = vector.load %arg16[%c0_39, %c16] : memref<8x32xbf16, #tpu.memory_space<vmem>>, vector<8x8xbf16>
    tpu.vector_store %arg16[%c0_39, %c16], %113 {strides = array<i32>} : memref<8x32xbf16, #tpu.memory_space<vmem>>, vector<8x8xbf16>,
    %115 = vector.extract_strided_slice %32 {offsets = [0, 24], sizes = [8, 8], strides = [1, 1]} : vector<8x96xf32> to vector<8x8xf32>
    %116 = vector.extract_strided_slice %32 {offsets = [0, 56], sizes = [8, 8], strides = [1, 1]} : vector<8x96xf32> to vector<8x8xf32>
    %117 = vector.extract_strided_slice %32 {offsets = [0, 88], sizes = [8, 8], strides = [1, 1]} : vector<8x96xf32> to vector<8x8xf32>
    %118 = arith.truncf %115 : vector<8x8xf32> to vector<8x8xbf16>
    %119 = arith.truncf %116 : vector<8x8xf32> to vector<8x8xbf16>
    %cst_40 = arith.constant dense<0.000000e+00> : vector<8x8xf32>
    %120 = tpu.matmul %118, %119, %cst_40 {dimension_numbers = #tpu.dot_dimension_numbers<[1], [1], [0], [0], [0, 0, 1, 0], [], []>} : vector<8x8xbf16>, vector<8x8xbf16>, vector<8x8xf32> -> vector<8x8xf32>
    %cst_41 = arith.constant 0.353553385 : f32
    %121 = vector.broadcast %cst_41 : f32 to vector<8x8xf32>
    %122 = arith.mulf %120, %121 : vector<8x8xf32>
    %123 = vector.broadcast %39 : vector<1x8xf32> to vector<8x8xf32>
    %124 = arith.addf %122, %123 : vector<8x8xf32>
    %cst_42 = arith.constant dense<0xFF800000> : vector<8xf32>
    %125 = vector.multi_reduction <maximumf>, %124, %cst_42 [1] : vector<8x8xf32> to vector<8xf32>
    %126 = vector.shape_cast %125 : vector<8xf32> to vector<8x1xf32>
    %127 = vector.broadcast %126 : vector<8x1xf32> to vector<8x8xf32>
    %128 = arith.subf %124, %127 : vector<8x8xf32>
    %129 = math.exp %128 : vector<8x8xf32>
    %cst_43 = arith.constant dense<0.000000e+00> : vector<8xf32>
    %130 = vector.multi_reduction <add>, %129, %cst_43 [1] : vector<8x8xf32> to vector<8xf32>
    %131 = vector.shape_cast %130 : vector<8xf32> to vector<8x1xf32>
    %132 = tpu.reciprocal %131 {approx = true} : vector<8x1xf32> -> vector<8x1xf32>
    %133 = vector.broadcast %132 : vector<8x1xf32> to vector<8x8xf32>
    %134 = arith.mulf %129, %133 : vector<8x8xf32>
    %135 = arith.truncf %134 : vector<8x8xf32> to vector<8x8xbf16>
    %136 = arith.truncf %117 : vector<8x8xf32> to vector<8x8xbf16>
    %cst_44 = arith.constant dense<0.000000e+00> : vector<8x8xf32>
    %137 = tpu.matmul %135, %136, %cst_44 {dimension_numbers = #tpu.dot_dimension_numbers<[1], [0], [0], [1], [0, 0, 1, 1], [], []>} : vector<8x8xbf16>, vector<8x8xbf16>, vector<8x8xf32> -> vector<8x8xf32>
    %138 = arith.truncf %137 : vector<8x8xf32> to vector<8x8xbf16>
    %c0_45 = arith.constant 0 : index
    %c24 = arith.constant 24 : index
    %139 = vector.load %arg16[%c0_45, %c24] : memref<8x32xbf16, #tpu.memory_space<vmem>>, vector<8x8xbf16>
    tpu.vector_store %arg16[%c0_45, %c24], %138 {strides = array<i32>} : memref<8x32xbf16, #tpu.memory_space<vmem>>, vector<8x8xbf16>,
    %c0_46 = arith.constant 0 : index
    %c0_47 = arith.constant 0 : index
    %140 = vector.load %arg16[%c0_46, %c0_47] : memref<8x32xbf16, #tpu.memory_space<vmem>>, vector<8x32xbf16>
    %c0_48 = arith.constant 0 : index
    %c0_49 = arith.constant 0 : index
    %141 = vector.load %arg7[%c0_48, %c0_49] : memref<32x32xbf16, #tpu.memory_space<vmem>>, vector<32x32xbf16>
    %cst_50 = arith.constant dense<0.000000e+00> : vector<8x32xf32>
    %142 = tpu.matmul %140, %141, %cst_50 {dimension_numbers = #tpu.dot_dimension_numbers<[1], [0], [0], [1], [0, 0, 1, 1], [], []>} : vector<8x32xbf16>, vector<32x32xbf16>, vector<8x32xf32> -> vector<8x32xf32>
    %c0_51 = arith.constant 0 : index
    %c0_52 = arith.constant 0 : index
    %143 = vector.load %arg8[%c0_51, %c0_52] : memref<1x32xf32, #tpu.memory_space<vmem>>, vector<1x32xf32>
    %144 = vector.broadcast %143 : vector<1x32xf32> to vector<8x32xf32>
    %145 = arith.addf %142, %144 : vector<8x32xf32>
    %146 = arith.addf %1, %145 : vector<8x32xf32>
    %c0_53 = arith.constant 0 : index
    %c0_54 = arith.constant 0 : index
    %147 = vector.load %arg9[%c0_53, %c0_54] : memref<1x32xf32, #tpu.memory_space<vmem>>, vector<1x32xf32>
    %c0_55 = arith.constant 0 : index
    %c0_56 = arith.constant 0 : index
    %148 = vector.load %arg10[%c0_55, %c0_56] : memref<1x32xf32, #tpu.memory_space<vmem>>, vector<1x32xf32>
    %cst_57 = arith.constant dense<0.000000e+00> : vector<8xf32>
    %149 = vector.multi_reduction <add>, %146, %cst_57 [1] : vector<8x32xf32> to vector<8xf32>
    %150 = vector.shape_cast %149 : vector<8xf32> to vector<8x1xf32>
    %cst_58 = arith.constant 3.200000e+01 : f32
    %151 = vector.broadcast %cst_58 : f32 to vector<8x1xf32>
    %152 = arith.divf %150, %151 : vector<8x1xf32>
    %153 = vector.broadcast %152 : vector<8x1xf32> to vector<8x32xf32>
    %154 = arith.subf %146, %153 : vector<8x32xf32>
    %155 = arith.mulf %154, %154 : vector<8x32xf32>
    %cst_59 = arith.constant dense<0.000000e+00> : vector<8xf32>
    %156 = vector.multi_reduction <add>, %155, %cst_59 [1] : vector<8x32xf32> to vector<8xf32>
    %157 = vector.shape_cast %156 : vector<8xf32> to vector<8x1xf32>
    %cst_60 = arith.constant 3.100000e+01 : f32
    %158 = vector.broadcast %cst_60 : f32 to vector<8x1xf32>
    %159 = arith.divf %157, %158 : vector<8x1xf32>
    %160 = math.sqrt %159 : vector<8x1xf32>
    %cst_61 = arith.constant 9.99999997E-7 : f32
    %161 = vector.broadcast %cst_61 : f32 to vector<8x1xf32>
    %162 = arith.addf %160, %161 : vector<8x1xf32>
    %163 = tpu.reciprocal %162 {approx = true} : vector<8x1xf32> -> vector<8x1xf32>
    %164 = vector.broadcast %152 : vector<8x1xf32> to vector<8x32xf32>
    %165 = arith.subf %146, %164 : vector<8x32xf32>
    %166 = vector.broadcast %147 : vector<1x32xf32> to vector<8x32xf32>
    %167 = arith.mulf %166, %165 : vector<8x32xf32>
    %168 = vector.broadcast %163 : vector<8x1xf32> to vector<8x32xf32>
    %169 = arith.mulf %167, %168 : vector<8x32xf32>
    %170 = vector.broadcast %148 : vector<1x32xf32> to vector<8x32xf32>
    %171 = arith.addf %169, %170 : vector<8x32xf32>
    %172 = arith.truncf %171 : vector<8x32xf32> to vector<8x32xbf16>
    %c0_62 = arith.constant 0 : index
    %c0_63 = arith.constant 0 : index
    %173 = vector.load %arg11[%c0_62, %c0_63] : memref<32x64xbf16, #tpu.memory_space<vmem>>, vector<32x64xbf16>
    %cst_64 = arith.constant dense<0.000000e+00> : vector<8x64xf32>
    %174 = tpu.matmul %172, %173, %cst_64 {dimension_numbers = #tpu.dot_dimension_numbers<[1], [0], [0], [1], [0, 0, 1, 1], [], []>} : vector<8x32xbf16>, vector<32x64xbf16>, vector<8x64xf32> -> vector<8x64xf32>
    %c0_65 = arith.constant 0 : index
    %c0_66 = arith.constant 0 : index
    %175 = vector.load %arg12[%c0_65, %c0_66] : memref<1x64xf32, #tpu.memory_space<vmem>>, vector<1x64xf32>
    %176 = vector.broadcast %175 : vector<1x64xf32> to vector<8x64xf32>
    %177 = arith.addf %174, %176 : vector<8x64xf32>
    %cst_67 = arith.constant 0.000000e+00 : f32
    %178 = vector.broadcast %cst_67 : f32 to vector<8x64xf32>
    %179 = arith.maximumf %177, %178 : vector<8x64xf32>
    %180 = arith.truncf %179 : vector<8x64xf32> to vector<8x64xbf16>
    %c0_68 = arith.constant 0 : index
    %c0_69 = arith.constant 0 : index
    %181 = vector.load %arg13[%c0_68, %c0_69] : memref<64x32xbf16, #tpu.memory_space<vmem>>, vector<64x32xbf16>
    %cst_70 = arith.constant dense<0.000000e+00> : vector<8x32xf32>
    %182 = tpu.matmul %180, %181, %cst_70 {dimension_numbers = #tpu.dot_dimension_numbers<[1], [0], [0], [1], [0, 0, 1, 1], [], []>} : vector<8x64xbf16>, vector<64x32xbf16>, vector<8x32xf32> -> vector<8x32xf32>
    %c0_71 = arith.constant 0 : index
    %c0_72 = arith.constant 0 : index
    %183 = vector.load %arg14[%c0_71, %c0_72] : memref<1x32xf32, #tpu.memory_space<vmem>>, vector<1x32xf32>
    %184 = vector.broadcast %183 : vector<1x32xf32> to vector<8x32xf32>
    %185 = arith.addf %182, %184 : vector<8x32xf32>
    %186 = arith.addf %146, %185 : vector<8x32xf32>
    %c0_73 = arith.constant 0 : index
    %c0_74 = arith.constant 0 : index
    %c0_75 = arith.constant 0 : index
    %187 = vector.load %arg15[%c0_73, %c0_74, %c0_75] : memref<1x8x32xf32, #tpu.memory_space<vmem>>, vector<1x8x32xf32>
    %188 = vector.shape_cast %187 : vector<1x8x32xf32> to vector<8x32xf32>
    %189 = vector.shape_cast %186 : vector<8x32xf32> to vector<1x8x32xf32>
    tpu.vector_store %arg15[%c0_73, %c0_74, %c0_75], %189 {strides = array<i32>} : memref<1x8x32xf32, #tpu.memory_space<vmem>>, vector<1x8x32xf32>,
    return
  }
  func.func @transform_0(%arg0: i32) -> (i32, i32, i32) {
    %c0_i32 = arith.constant 0 : i32
    %c0_i32_0 = arith.constant 0 : i32
    %c0_i32_1 = arith.constant 0 : i32
    return %arg0, %c0_i32, %c0_i32_0 : i32, i32, i32
  }
  func.func @transform_1(%arg0: i32) -> (i32, i32, i32) {
    %c0_i32 = arith.constant 0 : i32
    %c0_i32_0 = arith.constant 0 : i32
    %c0_i32_1 = arith.constant 0 : i32
    return %arg0, %c0_i32, %c0_i32_0 : i32, i32, i32
  }
  func.func @transform_2(%arg0: i32) -> (i32, i32) {
    %c0_i32 = arith.constant 0 : i32
    %c0_i32_0 = arith.constant 0 : i32
    %c0_i32_1 = arith.constant 0 : i32
    return %c0_i32, %c0_i32_0 : i32, i32
  }
  func.func @transform_3(%arg0: i32) -> (i32, i32) {
    %c0_i32 = arith.constant 0 : i32
    %c0_i32_0 = arith.constant 0 : i32
    %c0_i32_1 = arith.constant 0 : i32
    return %c0_i32, %c0_i32_0 : i32, i32
  }
  func.func @transform_4(%arg0: i32) -> (i32, i32) {
    %c0_i32 = arith.constant 0 : i32
    %c0_i32_0 = arith.constant 0 : i32
    %c0_i32_1 = arith.constant 0 : i32
    return %c0_i32, %c0_i32_0 : i32, i32
  }
  func.func @transform_5(%arg0: i32) -> (i32, i32) {
    %c0_i32 = arith.constant 0 : i32
    %c0_i32_0 = arith.constant 0 : i32
    %c0_i32_1 = arith.constant 0 : i32
    return %c0_i32, %c0_i32_0 : i32, i32
  }
  func.func @transform_6(%arg0: i32) -> (i32, i32) {
    %c0_i32 = arith.constant 0 : i32
    %c0_i32_0 = arith.constant 0 : i32
    %c0_i32_1 = arith.constant 0 : i32
    return %c0_i32, %c0_i32_0 : i32, i32
  }
  func.func @transform_7(%arg0: i32) -> (i32, i32) {
    %c0_i32 = arith.constant 0 : i32
    %c0_i32_0 = arith.constant 0 : i32
    %c0_i32_1 = arith.constant 0 : i32
    return %c0_i32, %c0_i32_0 : i32, i32
  }
  func.func @transform_8(%arg0: i32) -> (i32, i32) {
    %c0_i32 = arith.constant 0 : i32
    %c0_i32_0 = arith.constant 0 : i32
    %c0_i32_1 = arith.constant 0 : i32
    return %c0_i32, %c0_i32_0 : i32, i32
  }
  func.func @transform_9(%arg0: i32) -> (i32, i32) {
    %c0_i32 = arith.constant 0 : i32
    %c0_i32_0 = arith.constant 0 : i32
    %c0_i32_1 = arith.constant 0 : i32
    return %c0_i32, %c0_i32_0 : i32, i32
  }
  func.func @transform_10(%arg0: i32) -> (i32, i32) {
    %c0_i32 = arith.constant 0 : i32
    %c0_i32_0 = arith.constant 0 : i32
    %c0_i32_1 = arith.constant 0 : i32
    return %c0_i32, %c0_i32_0 : i32, i32
  }
  func.func @transform_11(%arg0: i32) -> (i32, i32) {
    %c0_i32 = arith.constant 0 : i32
    %c0_i32_0 = arith.constant 0 : i32
    %c0_i32_1 = arith.constant 0 : i32
    return %c0_i32, %c0_i32_0 : i32, i32
  }
  func.func @transform_12(%arg0: i32) -> (i32, i32) {
    %c0_i32 = arith.constant 0 : i32
    %c0_i32_0 = arith.constant 0 : i32
    %c0_i32_1 = arith.constant 0 : i32
    return %c0_i32, %c0_i32_0 : i32, i32
  }
  func.func @transform_13(%arg0: i32) -> (i32, i32) {
    %c0_i32 = arith.constant 0 : i32
    %c0_i32_0 = arith.constant 0 : i32
    %c0_i32_1 = arith.constant 0 : i32
    return %c0_i32, %c0_i32_0 : i32, i32
  }
  func.func @transform_14(%arg0: i32) -> (i32, i32, i32) {
    %c0_i32 = arith.constant 0 : i32
    %c0_i32_0 = arith.constant 0 : i32
    %c0_i32_1 = arith.constant 0 : i32
    return %arg0, %c0_i32, %c0_i32_0 : i32, i32, i32
  }
}

</mosaic_0001>

<bundles_post_ra>
// kernel: tpu_custom_call.1
= control target key start
LH: loop header
LB: loop body
LE: loop exit
PB: predicated region body
PF: predicated region fallthrough
CT: control target
= control target key end

     0   :  { %s2649_s0 = inlined_call_operand.vmem [shape: f32[2,8,32], index: 0, kind: input, shape index: {}]   ;;  %s2650_s1 = inlined_call_operand.hbm [shape: f32[2,1,8], index: 1, kind: input, shape index: {}]   ;;  %s2651_s2 = inlined_call_operand.hbm [shape: f32[1,32], index: 2, kind: input, shape index: {}]   ;;  %s2652_s3 = inlined_call_operand.hbm [shape: f32[1,32], index: 3, kind: input, shape index: {}]   ;;  %s2653_s4 = inlined_call_operand.vmem [shape: bf16[32,96], index: 4, kind: input, shape index: {}]   ;;  %s2654_s5 = inlined_call_operand.hbm [shape: f32[1,96], index: 5, kind: input, shape index: {}]   ;;  %s2655_s6 = inlined_call_operand.vmem [shape: bf16[32,32], index: 6, kind: input, shape index: {}]   ;;  %s2656_s7 = inlined_call_operand.hbm [shape: f32[1,32], index: 7, kind: input, shape index: {}]   ;;  %s2657_s8 = inlined_call_operand.hbm [shape: f32[1,32], index: 8, kind: input, shape index: {}]   ;;  %s2658_s9 = inlined_call_operand.hbm [shape: f32[1,32], index: 9, kind: input, shape index: {}]   ;;  %s2659_s10 = inlined_call_operand.vmem [shape: bf16[32,64], index: 10, kind: input, shape index: {}]   ;;  %s2660_s11 = inlined_call_operand.vmem [shape: f32[1,64], index: 11, kind: input, shape index: {}]   ;;  %s2661_s12 = inlined_call_operand.vmem [shape: bf16[64,32], index: 12, kind: input, shape index: {}]   ;;  %s2662_s13 = inlined_call_operand.vmem [shape: f32[1,32], index: 13, kind: input, shape index: {}]   ;;  %s2663_s14 = inlined_call_operand.hbm [shape: f32[2,8,32], index: 14, kind: output, shape index: {}]  }
   0x1   :  { %2670 = sst [smem:[#allocation23_spill]] %s2651_s2 }
   0x2   :  { %2671 = sst [smem:[#allocation24_spill]] %s2652_s3 }
   0x3   :  { %2672 = sst [smem:[#allocation25_spill]] %s2654_s5 }
   0x4   :  { %2673 = sst [smem:[#allocation26_spill]] %s2656_s7 }
   0x5   :  { %2674 = sst [smem:[#allocation27_spill]] %s2657_s8 }
   0x6   :  { %2675 = sst [smem:[#allocation28_spill]] %s2658_s9 }
   0x7   :  { %2676 = sst [smem:[#allocation29_spill]] %s2663_s14 }
   0x8   :  { %19 = vsyncpa [#allocation4], 0 }
   0x9   :  { %21 = vsyncpa [#allocation4 + $0x1], 0 }
   0xa   :  { %22 = vsyncpa [#allocation7], 0 }
   0xb   :  { %23 = vsyncpa [#allocation10], 0 }
   0xc   :  { %24 = vsyncpa [#allocation13], 0 }
   0xd   :  { %25 = vsyncpa [#allocation5], 0 }
   0xe   :  { %27 = vsyncpa [#allocation5 + $0x1], 0  ;;  %s2268_s29 = smov 0   ;;  %s2270_s30 = smov 0  }
   0xf   :  { %s2272_s15 = smov 0   ;;  %s2274_s16 = smov 0  }
  0x10 LB: > { %2677 = sst [smem:[#allocation21_spill]] %s2163_s15  ;;  %s2169_s17 = smov [#allocation6]   ;;  %s2167_s16 = sphi %s2274_s16, %s2710_s16   ;;  %s2163_s15 = sphi %s2272_s15, %s2707_s15   ;;  %s2159_s30 = sphi %s2270_s30, %s2709_s30   ;;  %s2155_s29 = sphi %s2268_s29, %s2708_s29  }
  0x11   : > { %s381_s18 = sshll.u32 %s2169_s17, 4  ;;  %s2289_s19 = sadd.s32 4294967295, %s2167_s16   ;;  %s382_s18 = int_to_ptr.vmem [resolvable:$true] %s381_s18 }
  0x12   : > { %p1578_p0 = scmp.ge.s32.totalorder %s2167_s16, 1  ;;  %p2665_p1 = scmp.eq.s32.totalorder %s2289_s19, 0 }
  0x13   : > { %p368_p2 = scmp.lt.s32.totalorder %s2167_s16, 3  ;;  %s2170_s21 = smov [#allocation9]  }
  0x14   : > { %s406_s22 = sshll.u32 %s2170_s21, 4  ;;  %s2171_s23 = smov [#allocation12]   ;;  %s2301_s22 = int_to_ptr.vmem [resolvable:$true] %s406_s22 }
  0x15   : > { %p2294_p3 = pnand %p1578_p0, %p368_p2  ;;  %s431_s24 = sshll.u32 %s2171_s23, 4  ;;  %s2309_s24 = int_to_ptr.vmem [resolvable:$true] %s431_s24 }
  0x16   : > { %s2172_s26 = smov [#allocation8]   ;;  %s1918_s17 = scalar_lea.vmem %s382_s18, 16 }
  0x17   : > { %s2678_s20 = scalar_select %p2294_p3, 1, 0 }
  0x18   : > { %p1778_p5 = pneg %p2294_p3  ;;  %s2311_s27 = sshll.u32 %s2172_s26, 4  ;;  %s393_s27 = int_to_ptr.vmem [resolvable:$true] %s2311_s27 }
  0x19   : > { %p1919_p8 = scmp.ne.s32.totalorder %s382_s18, %s1918_s17  ;;  %s1925_s21 = scalar_lea.vmem %s382_s18, 32 }
  0x1a   : > { %p2305_p6 = pnand %p1778_p5, %p2665_p1  ;;  %p1926_p11 = scmp.lt.s32.totalorder %s382_s18, %s382_s18 }
  0x1b   : > { %p1927_p12 = scmp.lt.s32.totalorder %s1925_s21, %s1918_s17 }
  0x1c   : > { %p2315_p7 = pneg %p2305_p6 }
  0x1d   : > { %p1928_p13 = por %p1927_p12, %p1926_p11 }
  0x1e   : > { %p1921_p9 = pnand %p1919_p8, %p2315_p7 }
  0x20   : > { %p1922_p10 = pneg %p1921_p9 }
  0x22   : > { %p1929_p0 = pnand %p1928_p13, %p1922_p10 }
  0x24   : > { %1932 = shalt.err (!%p1929_p0)
}
  0x25   : > { %s2681_s2 = sld [smem:[#allocation23_spill]]  ;;  %s1944_s14 = scalar_lea.vmem %s2301_s22, 16 }
  0x26   : > { %p1945_p2 = scmp.ne.s32.totalorder %s2301_s22, %s1944_s14  ;;  %s1951_s17 = scalar_lea.vmem %s2301_s22, 32 }
  0x27   : > { %p1952_p9 = scmp.lt.s32.totalorder %s2301_s22, %s2301_s22  ;;  %p1953_p10 = scmp.lt.s32.totalorder %s1951_s17, %s1944_s14 }
  0x28   : > { %p1947_p5 = pnand %p1945_p2, %p2315_p7 }
  0x29   : > { %p1954_p11 = por %p1953_p10, %p1952_p9 }
  0x2a   : > { %p1948_p8 = pneg %p1947_p5 }
  0x2b   : > { %1781 = dma.hbm_to_vmem [thread:$0]  (!%p2305_p6), %s2681_s2, 16, %s382_s18, [#allocation7]  }
  0x2c   : > { %p1955_p12 = pnand %p1954_p11, %p1948_p8 }
  0x2e   : > { %1958 = shalt.err (!%p1955_p12)
}
  0x2f   : > { %s2682_s5 = sld [smem:[#allocation25_spill]]  ;;  %s1970_s18 = scalar_lea.vmem %s2309_s24, 16 }
  0x30   : > { %p1971_p13 = scmp.ne.s32.totalorder %s2309_s24, %s1970_s18  ;;  %s1977_s14 = scalar_lea.vmem %s2309_s24, 32 }
  0x31   : > { %p1978_p5 = scmp.lt.s32.totalorder %s2309_s24, %s2309_s24  ;;  %p1979_p8 = scmp.lt.s32.totalorder %s1977_s14, %s1970_s18 }
  0x32   : > { %p1973_p0 = pnand %p1971_p13, %p2315_p7 }
  0x33   : > { %p1980_p9 = por %p1979_p8, %p1978_p5 }
  0x34   : > { %p1974_p2 = pneg %p1973_p0 }
  0x35   : > { %1787 = dma.hbm_to_vmem [thread:$0]  (!%p2305_p6), %s2682_s5, 16, %s2301_s22, [#allocation10]  }
  0x36   : > { %p1981_p10 = pnand %p1980_p9, %p1974_p2 }
  0x38   : > { %1984 = shalt.err (!%p1981_p10)
}
  0x39   : > { %s2683_s8 = sld [smem:[#allocation27_spill]]  ;;  %s2173_s22 = smov [#allocation11]  }
  0x3a   : > { %s420_s21 = sshll.u32 %s2173_s22, 4  ;;  %s1996_s23 = scalar_lea.vmem %s393_s27, 16  ;;  %s421_s21 = int_to_ptr.vmem [resolvable:$true] %s420_s21 }
  0x3b   : > { %p1997_p11 = scmp.ne.s32.totalorder %s393_s27, %s1996_s23  ;;  %s2003_s18 = scalar_lea.vmem %s393_s27, 32 }
  0x3c   : > { %p2004_p0 = scmp.lt.s32.totalorder %s393_s27, %s393_s27  ;;  %p2005_p2 = scmp.lt.s32.totalorder %s2003_s18, %s1996_s23 }
  0x3d   : > { %p1999_p12 = pnand %p1997_p11, %p2315_p7 }
  0x3e   : > { %p2006_p5 = por %p2005_p2, %p2004_p0 }
  0x3f   : > { %1793 = dma.hbm_to_vmem [thread:$0]  (!%p2305_p6), %s2683_s8, 16, %s2309_s24, [#allocation13]  }
  0x40   : > { %p2000_p13 = pneg %p1999_p12 }
  0x42   : > { %p2007_p8 = pnand %p2006_p5, %p2000_p13 }
  0x44   : > { %2010 = shalt.err (!%p2007_p8)
}
  0x45   : > { %s2684_s3 = sld [smem:[#allocation24_spill]]  ;;  %s2022_s24 = scalar_lea.vmem %s421_s21, 16 }
  0x46   : > { %p2023_p9 = scmp.ne.s32.totalorder %s421_s21, %s2022_s24  ;;  %s2029_s17 = scalar_lea.vmem %s421_s21, 32 }
  0x47   : > { %p2030_p12 = scmp.lt.s32.totalorder %s421_s21, %s421_s21  ;;  %p2031_p4 = scmp.lt.s32.totalorder %s2029_s17, %s2022_s24 }
  0x48   : > { %p2025_p10 = pnand %p2023_p9, %p2315_p7 }
  0x49   : > { %p2032_p1 = por %p2031_p4, %p2030_p12 }
  0x4a   : > { %p2026_p11 = pneg %p2025_p10 }
  0x4b   : > { %1784 = dma.hbm_to_vmem [thread:$0]  (!%p2305_p6), %s2684_s3, 16, %s393_s27, [#allocation7]  }
  0x4c   : > { %p2033_p0 = pnand %p2032_p1, %p2026_p11 }
  0x4e   : > { %2036 = shalt.err (!%p2033_p0)
}
  0x4f   : > { %s2685_s7 = sld [smem:[#allocation26_spill]]  ;;  %s2174_s27 = smov [#allocation14]  }
  0x50   : > { %s442_s18 = sshll.u32 %s2174_s27, 4  ;;  %s443_s18 = int_to_ptr.vmem [resolvable:$true] %s442_s18 }
  0x51   : > { %s2048_s14 = scalar_lea.vmem %s443_s18, 16  ;;  %s2055_s26 = scalar_lea.vmem %s443_s18, 32 }
  0x52   : > { %p2049_p13 = scmp.ne.s32.totalorder %s443_s18, %s2048_s14  ;;  %p2056_p8 = scmp.lt.s32.totalorder %s443_s18, %s443_s18 }
  0x53   : > { %p2057_p4 = scmp.lt.s32.totalorder %s2055_s26, %s2048_s14 }
  0x54   : > { %p2051_p2 = pnand %p2049_p13, %p2315_p7 }
  0x55   : > { %1790 = dma.hbm_to_vmem [thread:$0]  (!%p2305_p6), %s2685_s7, 16, %s421_s21, [#allocation10]  }
  0x56   : > { %p2052_p5 = pneg %p2051_p2  ;;  %p2058_p1 = por %p2057_p4, %p2056_p8 }
  0x58   : > { %p2059_p9 = pnand %p2058_p1, %p2052_p5 }
  0x5a   : > { %2062 = shalt.err (!%p2059_p9)
}
  0x5b   : > { %s2686_s9 = sld [smem:[#allocation28_spill]]  ;;  %s1577_s28 = sadd.s32 4294967294, %s2167_s16  }
  0x5c   : > { %s2376_s25 = sadd.s32 1, %s2167_s16   ;;  %s66_s22 = sadd.s32 1, %s2163_s15 }
  0x5d   : > { %s63_s21 = ssub.s32 %s2167_s16, %s2376_s25  ;;  %p73_p10 = scmp.ne.s32.totalorder %s2163_s15, %s2159_s30 }
  0x5e   : > { %p64_p7 = scmp.eq.s32.totalorder %s63_s21, 0  ;;  %p74_p11 = scmp.eq.s32.totalorder %s2167_s16, 0 }
  0x5f   : > { %p79_p12 = scmp.ne.s32.totalorder %s2159_s30, %s2155_s29  ;;  %p2689_p13 = scmp.eq.s32.totalorder %s2289_s19, 0 }
  0x60   : > { %s2387_s23 = scalar_select %p64_p7, %s2163_s15, %s66_s22  }
  0x61   : > { %1796 = dma.hbm_to_vmem [thread:$0]  (!%p2305_p6), %s2686_s9, 16, %s443_s18, [#allocation13]  }
  0x62   : > { %2687 = sst [smem:[#allocation22_spill]] %s2387_s23  ;;  %p2389_p0 = por %p74_p11, %p73_p10 }
  0x63   : > { %p2395_p6 = por %p2689_p13, %p79_p12  ;;  %p355_p2 = scmp.eq.s32.totalorder %s2289_s19, 1 }
  0x64   : > { %p361_p5 = scmp.eq.s32.totalorder %s1577_s28, 1  ;;  %p1811_p8 = scmp.lt.s32.totalorder %s2167_s16, 2 }
  0x65   : > { %s2690_s18 = scalar_select %p2395_p6, 1, 0 }
  0x66   : > { %s472_s14 = sand.u32 1, %s2163_s15   ;;  %p2402_p4 = por %p355_p2, %p73_p10 }
  0x67   : > { %p2406_p1 = por %p361_p5, %p79_p12  ;;  %s1586_s17 = sshll.u32 %s2167_s16, 4 }
  0x68   : > { %s2691_s26 = scalar_select %p2402_p4, 1, 0 }
  0x69   : > { %s2692_s24 = scalar_select %p2406_p1, 1, 0 }
  0x6a   : > { %s475_s21 = scalar_lea.vmem [#allocation3], %s472_s14  ;;  %s2414_s5 = scalar_lea.hbm %s2650_s1, %s1586_s17 }
  0x6b   : > { %s482_s22 = sshll.u32 %s475_s21, 4  ;;  %p2418_p9 = pnand %p1811_p8, %p2389_p0  ;;  %s483_s22 = int_to_ptr.vmem [resolvable:$true] %s482_s22 }
  0x6c   : > { %s473_s7 = scalar_lea.sflag [#allocation4], %s472_s14  ;;  %s2063_s8 = scalar_lea.hbm %s2414_s5, 16 }
  0x6d   : > { %p2064_p7 = scmp.ne.s32.totalorder %s2414_s5, %s2063_s8  ;;  %p2065_p10 = pneg %p2418_p9 }
  0x6e   : > { %s2068_s17 = scalar_lea.hbm %s2650_s1, 32  ;;  %p2069_p13 = scmp.lt.s32.totalorder %s2414_s5, %s2650_s1 }
  0x6f   : > { %p2066_p11 = pnand %p2065_p10, %p2064_p7  ;;  %p2070_p0 = scmp.lt.s32.totalorder %s2068_s17, %s2063_s8 }
  0x71   : > { %p2067_p12 = pneg %p2066_p11  ;;  %p2071_p2 = por %p2070_p0, %p2069_p13 }
  0x73   : > { %p2072_p5 = pnand %p2071_p2, %p2067_p12 }
  0x75   : > { %2075 = shalt.err (!%p2072_p5)
}
  0x76   : > { %s2076_s27 = scalar_lea.vmem %s483_s22, 16  ;;  %s2175_s14 = smov [#allocation3]  }
  0x77   : > { %p2077_p8 = scmp.ne.s32.totalorder %s483_s22, %s2076_s27  ;;  %s2081_s23 = sshll.u32 %s2175_s14, 4  ;;  %s2082_s23 = int_to_ptr.vmem [resolvable:$false] %s2081_s23 }
  0x78   : > { %s2083_s15 = scalar_lea.vmem %s2082_s23, 32  ;;  %p2084_p7 = scmp.lt.s32.totalorder %s483_s22, %s2082_s23 }
  0x79   : > { %p2079_p1 = pnand %p2077_p8, %p2065_p10  ;;  %p2085_p11 = scmp.lt.s32.totalorder %s2083_s15, %s2076_s27 }
  0x7b   : > { %p2080_p4 = pneg %p2079_p1  ;;  %p2086_p6 = por %p2085_p11, %p2084_p7 }
  0x7d   : > { %p2087_p3 = pnand %p2086_p6, %p2080_p4 }
  0x7f   : > { %2090 = shalt.err (!%p2087_p3)
}
  0x80   : > { %1800 = dma.hbm_to_vmem [thread:$0]  (!%p2418_p9), %s2414_s5, 16, %s483_s22, %s473_s7  }
  0x81   : > { %p2694_p12 = scmp.ne.s32.totalorder %s2678_s20, 0 }
  0x82   : > { %s2439_s8 = sand.u32 (!%p2694_p12), 1, %s2159_s30   ;;  %p2695_p1 = scmp.ne.s32.totalorder (!%p2694_p12), %s2690_s18, 0 }
  0x83   : > { %491 = sbr.rel (%p2694_p12) target bundleno = 2622 (0xa3e), region = 76  ;;  %s494_s9 = scalar_lea.sflag (!%p2694_p12), [#allocation4], %s2439_s8 }
  0x84   : > { %s496_s2 = scalar_lea.vmem (!%p2694_p12), [#allocation3], %s2439_s8 }
  0x88   : > { %2134 = dma.done.wait (%p2695_p1), %s494_s9, 16  }
  0x89   : > { %2136 = vsyncadd (%p2695_p1), %s494_s9, 4294967280  ;;  %p2696_p3 = scmp.eq.s32.totalorder %s2289_s19, 0 }
  0x8b   : > { %2138 = dma.done.wait (%p2696_p3), [#allocation7], 32   ;;  %p2697_p6 = pmov %p2696_p3 }
  0x8c   : > { %p2698_p4 = pmov %p2696_p3 }
  0x8d   : > { %2140 = vsyncadd (%p2697_p6), [#allocation7], 4294967264 }
  0x8e   : > { %2142 = dma.done.wait (%p2698_p4), [#allocation10], 32   ;;  %p2699_p9 = pmov %p2696_p3 }
  0x8f   : > { %p2700_p10 = pmov %p2696_p3 }
  0x90   : > { %2144 = vsyncadd (%p2699_p9), [#allocation10], 4294967264 }
  0x91   : > { %2146 = dma.done.wait (%p2700_p10), [#allocation13], 32   ;;  %p2701_p13 = pmov %p2696_p3 }
  0x92   : > { %p568_p0 = scmp.lt.s32.totalorder %s2289_s19, 1  ;;  %vm576_vm0 = vcmask 261120   ;;  %v1873_v7 = vld [vmem:[%s2653_s4 + $0x8] sm:$0xff]   ;;  %v2176_v8 = vmov 0.0   ;;  %vm2177_vm1 = vmmov 0   ;;  %v1874_v9 = vld [vmem:[%s2653_s4] sm:$0xff]   ;;  %v736_v43 = vlaneseq }
  0x93   : > { %2148 = vsyncadd (%p2701_p13), [#allocation13], 4294967264  ;;  %1666 = vmatprep.subr.bf16.mxu0 %v2176_v8  ;;  %1670 = vmatprep.mubr.msk.bf16.mxu0 %vm2177_vm1, %v2176_v8  ;;  %v1596_v18 = vld [vmem:[#allocation6] ss:$0 sm:$0xff]  ;;  %v1597_v21 = vld [vmem:[#allocation8] ss:$0 sm:$0xff] }
  0x94   : > { %s569_s5 = scalar_select %p568_p0, %s2289_s19, 1  ;;  %1667 = vmatpush3.bf16.msra.mxu0 %v1873_v7  ;;  %1674 = vmatprep.subr.bf16.mxu1 %v2176_v8  ;;  %v1598_v25 = vld [vmem:[#allocation9] ss:$0 sm:$0xff]  ;;  %vm687_vm4 = vcmask 64512   ;;  %v680_v44 = vld [vmem:[%s496_s2] sm:$0x1] }
  0x95   : > { %1668 = vmatprep.subr.bf16.mxu0 %v2176_v8  ;;  %1676 = vmatprep.mubr.msk.bf16.mxu1 %vm2177_vm1, %v2176_v8  ;;  %s2178_s17 = smov 120   ;;  %s2179_s21 = smov 96   ;;  %v737_v45 = vshrl.u32 %v736_v43, 7  ;;  %vm681_vm5 = vcmp.eq.f32.partialorder %v680_v44, 0.0  ;;  %vm759_vm6 = vcmask 1043456   ;;  %vm804_vm7 = vcmask 60416  }
  0x96   : > { %s1595_s7 = sshll.u32 %s569_s5, 3  ;;  %s2180_s27 = smov 88   ;;  %v682_v47 = vsel %vm681_vm5, -1e+09, %v2176_v8  ;;  %vm925_vm8 = vcmask 126016   ;;  %vm1046_vm9 = vcmask 191616  }
  0x97   : > { %s571_s23 = scalar_lea.vmem %s2649_s0, %s1595_s7  ;;  %s2181_s14 = smov 80   ;;  %v738_v46 = vsub.s32 0, %v737_v45  ;;  %vm1167_vm10 = vcmask 257216   ;;  %vm1381_vm13 = vcmask 523264  }
  0x98   : > { %v2464_v0 = vld [vmem:[%s571_s23] sm:$0xff]  ;;  %1669 = vmatpush3.bf16.msra.mxu0 %v1874_v9  ;;  %s2182_s9 = smov 112   ;;  %s2183_s5 = smov 72  }
  0x99   : > { %v577_v1 = vsel %vm576_vm0, %v2464_v0, 0.0  ;;  %1680 = vmatprep.subr.bf16.mxu0 %v2176_v8  ;;  %s2184_s7 = smov 104   ;;  %v739_v48 = vrot.slane %v682_v47, %v738_v46  ;;  %s2185_s2 = smov 64  }
  0x9a   : > { %578 = vadd.xlane.f32.xlu0 %v577_v1  ;;  %s2186_s15 = smov 56   ;;  %s2187_s20 = smov 48  }
  0x9b   : > { %s2188_s23 = smov 40   ;;  %s2189_s18 = smov 8  }
  0x9c   : > { %p2703_p5 = scmp.ne.s32.totalorder %s2691_s26, 0  ;;  %s2192_s28 = smov [#allocation15]  }
  0x9d   : > { %s2095_s3 = sshll.u32 %s2192_s28, 4  ;;  %s2096_s3 = int_to_ptr.vmem [resolvable:$false] %s2095_s3 }
 0x123   : > { %v579_v2 = vpop.xlane.xlu0 %578 }
 0x124   : > { %v581_v3 = vmul.f32 0.03125, %v579_v2 }
 0x126   : > { %v582_v4 = vsub.f32 %v2464_v0, %v581_v3 }
 0x128   : > { %v583_v5 = vmul.f32 %v582_v4, %v582_v4  ;;  %v604_v19 = vmul.f32 %v1596_v18, %v582_v4 }
 0x12a   : > { %v584_v6 = vsel %vm576_vm0, %v583_v5, 0.0 }
 0x12b   : > { %585 = vadd.xlane.f32.xlu0 %v584_v6 }
 0x1b4   : > { %v586_v10 = vpop.xlane.xlu0 %585 }
 0x1b5   : > { %v588_v11 = vmul.f32 0.032258064, %v586_v10 }
 0x1b7   : > { %1883 = vrsqrt.f32 %v588_v11  ;;  %vm591_vm2 = vcmp.eq.f32.partialorder %v588_v11, inf  ;;  %v594_v14 = vand.u32 2147483648, %v588_v11  ;;  %vm593_vm3 = vcmp.eq.f32.partialorder %v588_v11, 0.0 }
 0x1c4   : > { %v1884_v12 = vpop.eup %1883 }
 0x1c5   : > { %v590_v13 = vmul.f32 %v1884_v12, %v588_v11 }
 0x1c7   : > { %v592_v15 = vsel %vm591_vm2, %v588_v11, %v590_v13 }
 0x1c8   : > { %v595_v16 = vsel %vm593_vm3, %v594_v14, %v592_v15 }
 0x1c9   : > { %v596_v17 = vadd.f32 1e-06, %v595_v16 }
 0x1cb   : > { %1885 = vrcp.f32 %v596_v17 }
 0x1d8   : > { %v1886_v20 = vpop.eup %1885 }
 0x1d9   : > { %v605_v22 = vmul.f32 %v1886_v20, %v604_v19 }
 0x1db   : > { %v612_v23 = vadd.f32 %v1597_v21, %v605_v22 }
 0x1dd   : > { %v613_v24 = vpack.c.bf16 %v612_v23, %v612_v23 }
 0x1df   : > { %1671 = vmatmul.mubr.msk.bf16.vlgmr.msra.gmra.mxu0 %vm576_vm0, %v613_v24 }
 0x1e0   : > { %1682 = vmatprep.mubr.msk.bf16.mxu0 %vm2177_vm1, %v2176_v8 }
 0x29f   : > { %v674_v26 = vpop.f32.mrf.mxu0 }
 0x2a0   : > { %v675_v27 = vadd.f32 %v1598_v25, %v674_v26 }
 0x2a1   : > { %v1672_v28 = vpop.f32.mrf.mxu0 }
 0x2a2   : > { %v2487_v29 = vpack.c.bf16 %v675_v27, %v675_v27 }
 0x2a3   : > { %v677_v30 = vpop.f32.mrf.mxu0 }
 0x2a4   : > { %806 = vrot.lane.b32.xlu0 %v2487_v29, %s2178_s17  ;;  %685 = vrot.lane.b32.xlu1 %v2487_v29, %s2179_s21  ;;  %s2190_s21 = smov 16   ;;  %s2097_s17 = scalar_lea.vmem %s2096_s3, 256 }
 0x2a5   : > { %v1673_v31 = vpop.f32.mrf.mxu0 }
 0x2a8   : > { %808 = vrot.lane.b32.xlu1 %v2487_v29, %s2180_s27  ;;  %s2191_s27 = smov 24  }
 0x2ac   : > { %929 = vrot.lane.b32.xlu1 %v2487_v29, %s2181_s14 }
 0x2b0   : > { %927 = vrot.lane.b32.xlu1 %v2487_v29, %s2182_s9 }
 0x2b4   : > { %1050 = vrot.lane.b32.xlu1 %v2487_v29, %s2183_s5  ;;  %s1630_s5 = sshll.u32 %s2289_s19, 7  ;;  %s1428_s19 = scalar_lea.sflag [#allocation5], %s2439_s8 }
 0x2b8   : > { %1048 = vrot.lane.b32.xlu1 %v2487_v29, %s2184_s7 }
 0x316   : > { %v686_v32 = vpop.permute.xlu1 %685  ;;  %v807_v37 = vpop.permute.xlu0 %806 }
 0x317   : > { %v692_v33 = vsel %vm687_vm4, %v686_v32, 0 }
 0x318   : > { %1675 = vmatpush3.bf16.xpose.msra.mxu1 %v692_v33 }
 0x319   : > { %1686 = vmatprep.subr.bf16.mxu1 %v2176_v8 }
 0x31a   : > { %v809_v34 = vpop.permute.xlu1 %808 }
 0x31b   : > { %v814_v35 = vsel %vm687_vm4, %v809_v34, 0 }
 0x31e   : > { %v930_v36 = vpop.permute.xlu1 %929 }
 0x31f   : > { %1677 = vmatmul.mubr.msk.bf16.vlgmr.msra.gmra.mxu1 %vm687_vm4, %v2487_v29  ;;  %v935_v39 = vsel %vm687_vm4, %v930_v36, 0 }
 0x320   : > { %1687 = vmatpush3.bf16.xpose.msra.mxu1 %v814_v35  ;;  %1688 = vmatprep.mubr.msk.bf16.mxu1 %vm2177_vm1, %v2176_v8 }
 0x321   : > { %1698 = vmatprep.subr.bf16.mxu1 %v2176_v8 }
 0x322   : > { %v928_v38 = vpop.permute.xlu1 %927 }
 0x326   : > { %v1051_v40 = vpop.permute.xlu1 %1050 }
 0x327   : > { %1689 = vmatmul.mubr.msk.bf16.vlgmr.msra.gmra.mxu1 %vm687_vm4, %v807_v37  ;;  %v1056_v41 = vsel %vm687_vm4, %v1051_v40, 0 }
 0x328   : > { %1699 = vmatpush3.bf16.xpose.msra.mxu1 %v935_v39  ;;  %1700 = vmatprep.mubr.msk.bf16.mxu1 %vm2177_vm1, %v2176_v8 }
 0x329   : > { %1710 = vmatprep.subr.bf16.mxu1 %v2176_v8 }
 0x32a   : > { %v1049_v42 = vpop.permute.xlu1 %1048 }
 0x32f   : > { %1701 = vmatmul.mubr.msk.bf16.vlgmr.msra.gmra.mxu1 %vm687_vm4, %v928_v38 }
 0x330   : > { %1711 = vmatpush3.bf16.xpose.msra.mxu1 %v1056_v41  ;;  %1712 = vmatprep.mubr.msk.bf16.mxu1 %vm2177_vm1, %v2176_v8 }
 0x331   : > { %1722 = vmatprep.subr.bf16.mxu1 %v2176_v8 }
 0x337   : > { %1713 = vmatmul.mubr.msk.bf16.vlgmr.msra.gmra.mxu1 %vm687_vm4, %v1049_v42 }
 0x338   : > { %1726 = vmatprep.mubr.msk.bf16.mxu1 %vm2177_vm1, %v2176_v8 }
 0x3df   : > { %v728_v49 = vpop.f32.mrf.mxu1 }
 0x3e0   : > { %v734_v50 = vmul.f32 0.35355338, %v728_v49 }
 0x3e1   : > { %v1678_v51 = vpop.f32.mrf.mxu1 }
 0x3e2   : > { %v741_v52 = vadd.f32 %v739_v48, %v734_v50 }
 0x3e3   : > { %v731_v53 = vpop.f32.mrf.mxu1 }
 0x3e4   : > { %v742_v54 = vsel %vm687_vm4, %v741_v52, -inf }
 0x3e5   : > { %743 = vmax.xlane.f32.xlu1 %v742_v54  ;;  %v1679_v55 = vpop.f32.mrf.mxu1 }
 0x3e7   : > { %v850_v56 = vpop.f32.mrf.mxu1 }
 0x3e8   : > { %v856_v57 = vmul.f32 0.35355338, %v850_v56 }
 0x3e9   : > { %v1690_v58 = vpop.f32.mrf.mxu1 }
 0x3ea   : > { %v857_v59 = vadd.f32 %v856_v57, %v739_v48 }
 0x3eb   : > { %v853_v60 = vpop.f32.mrf.mxu1 }
 0x3ec   : > { %v858_v61 = vsel %vm687_vm4, %v857_v59, -inf }
 0x3ed   : > { %859 = vmax.xlane.f32.xlu0 %v858_v61  ;;  %v1691_v62 = vpop.f32.mrf.mxu1 }
 0x3ef   : > { %v971_v63 = vpop.f32.mrf.mxu1 }
 0x3f0   : > { %v977_v1 = vmul.f32 0.35355338, %v971_v63 }
 0x3f1   : > { %v1702_v2 = vpop.f32.mrf.mxu1 }
 0x3f2   : > { %v978_v3 = vadd.f32 %v977_v1, %v739_v48 }
 0x3f3   : > { %v974_v4 = vpop.f32.mrf.mxu1 }
 0x3f4   : > { %v979_v5 = vsel %vm687_vm4, %v978_v3, -inf }
 0x3f5   : > { %980 = vmax.xlane.f32.xlu1 %v979_v5  ;;  %v1703_v6 = vpop.f32.mrf.mxu1 }
 0x3f6   : > { %v1875_v6 = vld [vmem:[%s2655_s6 + $0x8] sm:$0xff]  }
 0x3f7   : > { %v1092_v7 = vpop.f32.mrf.mxu1  ;;  %1723 = vmatpush3.bf16.msra.mxu1 %v1875_v6 }
 0x3f8   : > { %v1098_v9 = vmul.f32 0.35355338, %v1092_v7  ;;  %1724 = vmatprep.subr.bf16.mxu1 %v2176_v8 }
 0x3f9   : > { %v1714_v10 = vpop.f32.mrf.mxu1 }
 0x3fa   : > { %v1099_v11 = vadd.f32 %v1098_v9, %v739_v48  ;;  %v1876_v9 = vld [vmem:[%s2655_s6] sm:$0xff]  }
 0x3fb   : > { %v1095_v12 = vpop.f32.mrf.mxu1  ;;  %1725 = vmatpush3.bf16.msra.mxu1 %v1876_v9 }
 0x3fc   : > { %v1100_v13 = vsel %vm687_vm4, %v1099_v11, -inf  ;;  %1738 = vmatprep.subr.bf16.mxu1 %v2176_v8 }
 0x3fd   : > { %1101 = vmax.xlane.f32.xlu0 %v1100_v13  ;;  %v1715_v14 = vpop.f32.mrf.mxu1 }
 0x46e   : > { %v744_v15 = vpop.xlane.xlu1 %743 }
 0x46f   : > { %v745_v16 = vsub.f32 %v741_v52, %v744_v15 }
 0x471   : > { %v746_v17 = vmul.f32 1.442695, %v745_v16 }
 0x473   : > { %1887 = vpow2.f32 %v746_v17 }
 0x476   : > { %v860_v18 = vpop.xlane.xlu0 %859 }
 0x477   : > { %v861_v19 = vsub.f32 %v857_v59, %v860_v18 }
 0x479   : > { %v862_v20 = vmul.f32 1.442695, %v861_v19 }
 0x47b   : > { %1889 = vpow2.f32 %v862_v20 }
 0x47e   : > { %v981_v31 = vpop.xlane.xlu1 %980 }
 0x47f   : > { %v982_v32 = vsub.f32 %v978_v3, %v981_v31 }
 0x480   : > { %v1888_v21 = vpop.eup %1887 }
 0x481   : > { %v748_v22 = vsel %vm687_vm4, %v1888_v21, 0.0  ;;  %v983_v33 = vmul.f32 1.442695, %v982_v32 }
 0x482   : > { %749 = vadd.xlane.f32.xlu1 %v748_v22 }
 0x486   : > { %v1102_v23 = vpop.xlane.xlu0 %1101 }
 0x487   : > { %v1103_v24 = vsub.f32 %v1099_v11, %v1102_v23  ;;  %v1613_v23 = vld [vmem:[#allocation11] ss:$0 sm:$0xff] }
 0x488   : > { %v1890_v25 = vpop.eup %1889 }
 0x489   : > { %v1104_v26 = vmul.f32 1.442695, %v1103_v24  ;;  %v864_v27 = vsel %vm687_vm4, %v1890_v25, 0.0 }
 0x48a   : > { %865 = vadd.xlane.f32.xlu0 %v864_v27 }
 0x48b   : > { %1891 = vpow2.f32 %v1104_v26 }
 0x48c   : > { %1893 = vpow2.f32 %v983_v33 }
 0x493   : > { %754 = vrot.lane.b32.xlu1 %v2487_v29, %s2185_s2 }
 0x498   : > { %v1892_v28 = vpop.eup %1891 }
 0x499   : > { %v1106_v30 = vsel %vm687_vm4, %v1892_v28, 0.0  ;;  %v1894_v34 = vpop.eup %1893 }
 0x49a   : > { %1107 = vadd.xlane.f32.xlu0 %v1106_v30  ;;  %v985_v35 = vsel %vm687_vm4, %v1894_v34, 0.0 }
 0x4b0   : > { %870 = vrot.lane.b32.xlu0 %v2487_v29, %s2186_s15 }
 0x4b7   : > { %986 = vadd.xlane.f32.xlu1 %v985_v35 }
 0x4c8   : > { %991 = vrot.lane.b32.xlu1 %v2487_v29, %s2187_s20 }
 0x4cc   : > { %1112 = vrot.lane.b32.xlu1 %v2487_v29, %s2188_s23  ;;  %s2702_s23 = sld [smem:[#allocation29_spill]] }
 0x50b   : > { %v750_v36 = vpop.xlane.xlu1 %749 }
 0x50c   : > { %1895 = vrcp.f32 %v750_v36 }
 0x50f   : > { %v755_v37 = vpop.permute.xlu1 %754 }
 0x510   : > { %v761_v38 = vsel %vm759_vm6, %v755_v37, 0  ;;  %v1877_v37 = vld [vmem:[%s2659_s10 + $0x8] sm:$0xff]  }
 0x511   : > { %1681 = vmatpush3.bf16.msra.mxu0 %v761_v38  ;;  %v1879_v38 = vld [vmem:[%s2661_s12 + $0x18] sm:$0xff]  }
 0x512   : > { %1692 = vmatprep.subr.bf16.mxu0 %v2176_v8 }
 0x513   : > { %v866_v39 = vpop.xlane.xlu0 %865 }
 0x514   : > { %1897 = vrcp.f32 %v866_v39  ;;  %v1880_v39 = vld [vmem:[%s2661_s12 + $0x10] sm:$0xff]  }
 0x519   : > { %v1896_v40 = vpop.eup %1895 }
 0x51a   : > { %v752_v41 = vmul.f32 %v1896_v40, %v1888_v21 }
 0x51c   : > { %v753_v42 = vpack.c.bf16 %v752_v41, %v752_v41 }
 0x51e   : > { %1683 = vmatmul.mubr.msk.bf16.vlgmr.msra.gmra.mxu0 %vm687_vm4, %v753_v42 }
 0x51f   : > { %1694 = vmatprep.mubr.msk.bf16.mxu0 %vm2177_vm1, %v2176_v8 }
 0x521   : > { %v1898_v29 = vpop.eup %1897 }
 0x522   : > { %v868_v44 = vmul.f32 %v1898_v29, %v1890_v25 }
 0x523   : > { %v1108_v43 = vpop.xlane.xlu0 %1107 }
 0x524   : > { %v869_v47 = vpack.c.bf16 %v868_v44, %v868_v44 }
 0x527   : > { %v871_v45 = vpop.permute.xlu0 %870 }
 0x528   : > { %v876_v46 = vsel %vm759_vm6, %v871_v45, 0 }
 0x529   : > { %1693 = vmatpush3.bf16.msra.mxu0 %v876_v46 }
 0x52a   : > { %1704 = vmatprep.subr.bf16.mxu0 %v2176_v8 }
 0x52c   : > { %1695 = vmatmul.mubr.msk.bf16.vlgmr.msra.gmra.mxu0 %vm687_vm4, %v869_v47  ;;  %v1617_v47 = vld [vmem:[#allocation12] ss:$0 sm:$0xff] }
 0x52d   : > { %1706 = vmatprep.mubr.msk.bf16.mxu0 %vm2177_vm1, %v2176_v8 }
 0x540   : > { %v987_v48 = vpop.xlane.xlu1 %986 }
 0x541   : > { %1899 = vrcp.f32 %v987_v48 }
 0x542   : > { %1901 = vrcp.f32 %v1108_v43 }
 0x544   : > { %v992_v49 = vpop.permute.xlu1 %991 }
 0x545   : > { %v997_v50 = vsel %vm759_vm6, %v992_v49, 0 }
 0x546   : > { %1705 = vmatpush3.bf16.msra.mxu0 %v997_v50  ;;  %v1618_v50 = vld [vmem:[#allocation14] ss:$0 sm:$0xff] }
 0x547   : > { %1716 = vmatprep.subr.bf16.mxu0 %v2176_v8 }
 0x548   : > { %v1113_v53 = vpop.permute.xlu1 %1112 }
 0x549   : > { %v1118_v56 = vsel %vm759_vm6, %v1113_v53, 0 }
 0x54e   : > { %v1900_v51 = vpop.eup %1899 }
 0x54f   : > { %v989_v52 = vmul.f32 %v1900_v51, %v1894_v34  ;;  %v1902_v55 = vpop.eup %1901 }
 0x550   : > { %v1110_v57 = vmul.f32 %v1902_v55, %v1892_v28  ;;  %v1882_v55 = vld [vmem:[%s2661_s12] sm:$0xff]  }
 0x551   : > { %v990_v54 = vpack.c.bf16 %v989_v52, %v989_v52 }
 0x552   : > { %v1111_v58 = vpack.c.bf16 %v1110_v57, %v1110_v57 }
 0x553   : > { %1707 = vmatmul.mubr.msk.bf16.vlgmr.msra.gmra.mxu0 %vm687_vm4, %v990_v54  ;;  %v1881_v54 = vld [vmem:[%s2661_s12 + $0x8] sm:$0xff]  }
 0x554   : > { %1717 = vmatpush3.bf16.msra.mxu0 %v1118_v56  ;;  %1718 = vmatprep.mubr.msk.bf16.mxu0 %vm2177_vm1, %v2176_v8  ;;  %v1619_v56 = vld [vmem:[%s2660_s11] ss:$0 sm:$0xff] }
 0x555   : > { %1730 = vmatprep.subr.bf16.mxu0 %v2176_v8 }
 0x55b   : > { %1719 = vmatmul.mubr.msk.bf16.vlgmr.msra.gmra.mxu0 %vm687_vm4, %v1111_v58 }
 0x55c   : > { %1734 = vmatprep.mubr.msk.bf16.mxu0 %vm2177_vm1, %v2176_v8  ;;  %1731 = vmatpush3.bf16.msra.mxu0 %v1877_v37 }
 0x55d   : > { %1732 = vmatprep.subr.bf16.mxu0 %v2176_v8 }
 0x5de   : > { %v797_v59 = vpop.f32.mrf.mxu0 }
 0x5df   : > { %v803_v60 = vpack.c.bf16 %v797_v59, %v797_v59 }
 0x5e0   : > { %v1684_v61 = vpop.f32.mrf.mxu0 }
 0x5e1   : > { %805 = vst.msk [vmem:[#allocation2] sm:$0xf] %vm804_vm7, %v803_v60 }
 0x5e2   : > { %v800_v62 = vpop.f32.mrf.mxu0 }
 0x5e4   : > { %v1685_v63 = vpop.f32.mrf.mxu0 }
 0x5ec   : > { %v912_v1 = vpop.f32.mrf.mxu0 }
 0x5ed   : > { %v1633_v2 = vpack.c.bf16 %v912_v1, %v912_v1 }
 0x5ee   : > { %v1696_v3 = vpop.f32.mrf.mxu0 }
 0x5ef   : > { %922 = vrot.lane.b32.xlu0 %v1633_v2, %s2189_s18  ;;  %s2605_s18 = scalar_lea.hbm %s2702_s23, %s1630_s5 }
 0x5f0   : > { %v915_v4 = vpop.f32.mrf.mxu0 }
 0x5f2   : > { %v1697_v5 = vpop.f32.mrf.mxu0 }
 0x613   : > { %v1033_v7 = vpop.f32.mrf.mxu0 }
 0x614   : > { %v1634_v10 = vpack.c.bf16 %v1033_v7, %v1033_v7 }
 0x615   : > { %v1708_v11 = vpop.f32.mrf.mxu0 }
 0x616   : > { %1043 = vrot.lane.b32.xlu1 %v1634_v10, %s2190_s21 }
 0x617   : > { %v1036_v12 = vpop.f32.mrf.mxu0 }
 0x619   : > { %v1709_v13 = vpop.f32.mrf.mxu0 }
 0x61b   : > { %v1154_v14 = vpop.f32.mrf.mxu0 }
 0x61c   : > { %v1635_v15 = vpack.c.bf16 %v1154_v14, %v1154_v14 }
 0x61d   : > { %v1720_v16 = vpop.f32.mrf.mxu0 }
 0x61e   : > { %1164 = vrot.lane.b32.xlu0 %v1635_v15, %s2191_s27  ;;  %s1594_s27 = sshll.u32 %s2439_s8, 3 }
 0x61f   : > { %v1157_v17 = vpop.f32.mrf.mxu0  ;;  %s567_s7 = scalar_lea.vmem [#allocation15], %s1594_s27 }
 0x620   : > { %s1441_s2 = sshll.u32 %s567_s7, 4  ;;  %s2607_s2 = int_to_ptr.vmem [resolvable:$true] %s1441_s2 }
 0x621   : > { %v1721_v18 = vpop.f32.mrf.mxu0  ;;  %s2091_s22 = scalar_lea.vmem %s2607_s2, 128  ;;  %p2098_p11 = scmp.lt.s32.totalorder %s2607_s2, %s2096_s3 }
 0x622   : > { %p2092_p2 = scmp.ne.s32.totalorder %s2607_s2, %s2091_s22  ;;  %p2099_p12 = scmp.lt.s32.totalorder %s2097_s17, %s2091_s22 }
 0x624   : > { %p2093_p8 = pnand %p2092_p2, %p2703_p5  ;;  %p2100_p1 = por %p2099_p12, %p2098_p11 }
 0x626   : > { %p2094_p7 = pneg %p2093_p8 }
 0x628   : > { %p2101_p3 = pnand %p2100_p1, %p2094_p7 }
 0x661   : > { %v923_v19 = vpop.permute.xlu0 %922 }
 0x662   : > { %926 = vst.msk [vmem:[#allocation2] sm:$0xf] %vm925_vm8, %v923_v19 }
 0x688   : > { %v1044_v20 = vpop.permute.xlu1 %1043 }
 0x689   : > { %1047 = vst.msk [vmem:[#allocation2] sm:$0xf] %vm1046_vm9, %v1044_v20 }
 0x690   : > { %v1165_v21 = vpop.permute.xlu0 %1164 }
 0x691   : > { %1168 = vst.msk [vmem:[#allocation2] sm:$0xf] %vm1167_vm10, %v1165_v21 }
 0x698   : > { %v1169_v22 = vld [vmem:[#allocation2] sm:$0xf] }
 0x699   : > { %1727 = vmatmul.mubr.msk.bf16.vlgmr.msra.gmra.mxu1 %vm576_vm0, %v1169_v22 }
 0x69a   : > { %1746 = vmatprep.mubr.msk.bf16.mxu1 %vm2177_vm1, %v2176_v8  ;;  %1739 = vmatpush3.bf16.msra.mxu1 %v1879_v38 }
 0x69b   : > { %1740 = vmatprep.subr.bf16.mxu1 %v2176_v8 }
 0x69e   : > { %1741 = vmatpush3.bf16.msra.mxu1 %v1880_v39 }
 0x69f   : > { %1742 = vmatprep.subr.bf16.mxu1 %v2176_v8 }
 0x6a2   : > { %1743 = vmatpush3.bf16.msra.mxu1 %v1881_v54 }
 0x6a3   : > { %1744 = vmatprep.subr.bf16.mxu1 %v2176_v8  ;;  %v1623_v8 = vld [vmem:[%s2662_s13] ss:$0 sm:$0xff] }
 0x6a6   : > { %1745 = vmatpush3.bf16.msra.mxu1 %v1882_v55 }
 0x759   : > { %v1230_v24 = vpop.f32.mrf.mxu1 }
 0x75a   : > { %v1231_v25 = vadd.f32 %v1613_v23, %v1230_v24 }
 0x75b   : > { %v1728_v26 = vpop.f32.mrf.mxu1 }
 0x75c   : > { %v2564_v27 = vadd.f32 %v1231_v25, %v2464_v0  ;;  %v1878_v0 = vld [vmem:[%s2659_s10] sm:$0xff]  }
 0x75d   : > { %v1233_v28 = vpop.f32.mrf.mxu1  ;;  %1733 = vmatpush3.bf16.msra.mxu0 %v1878_v0 }
 0x75e   : > { %v1239_v30 = vsel %vm576_vm0, %v2564_v27, 0.0 }
 0x75f   : > { %1240 = vadd.xlane.f32.xlu1 %v1239_v30  ;;  %v1729_v31 = vpop.f32.mrf.mxu1 }
 0x7e8   : > { %v1241_v32 = vpop.xlane.xlu1 %1240 }
 0x7e9   : > { %v1242_v33 = vmul.f32 0.03125, %v1241_v32 }
 0x7eb   : > { %v1243_v34 = vsub.f32 %v2564_v27, %v1242_v33 }
 0x7ed   : > { %v1244_v35 = vmul.f32 %v1243_v34, %v1243_v34  ;;  %v1264_v48 = vmul.f32 %v1617_v47, %v1243_v34 }
 0x7ef   : > { %v1245_v36 = vsel %vm576_vm0, %v1244_v35, 0.0 }
 0x7f0   : > { %1246 = vadd.xlane.f32.xlu0 %v1245_v36 }
 0x879   : > { %v1247_v40 = vpop.xlane.xlu0 %1246 }
 0x87a   : > { %v1248_v41 = vmul.f32 0.032258064, %v1247_v40 }
 0x87c   : > { %1903 = vrsqrt.f32 %v1248_v41  ;;  %vm1251_vm11 = vcmp.eq.f32.partialorder %v1248_v41, inf  ;;  %v1254_v43 = vand.u32 2147483648, %v1248_v41  ;;  %vm1253_vm12 = vcmp.eq.f32.partialorder %v1248_v41, 0.0 }
 0x889   : > { %v1904_v42 = vpop.eup %1903 }
 0x88a   : > { %v1250_v29 = vmul.f32 %v1904_v42, %v1248_v41 }
 0x88c   : > { %v1252_v44 = vsel %vm1251_vm11, %v1248_v41, %v1250_v29 }
 0x88d   : > { %v1255_v45 = vsel %vm1253_vm12, %v1254_v43, %v1252_v44 }
 0x88e   : > { %v1256_v46 = vadd.f32 1e-06, %v1255_v45 }
 0x890   : > { %1905 = vrcp.f32 %v1256_v46 }
 0x89d   : > { %v1906_v49 = vpop.eup %1905 }
 0x89e   : > { %v1265_v51 = vmul.f32 %v1906_v49, %v1264_v48 }
 0x8a0   : > { %v1272_v52 = vadd.f32 %v1618_v50, %v1265_v51 }
 0x8a2   : > { %v1273_v53 = vpack.c.bf16 %v1272_v52, %v1272_v52 }
 0x8a4   : > { %1735 = vmatmul.mubr.msk.bf16.vlgmr.msra.gmra.mxu0 %vm576_vm0, %v1273_v53 }
 0x964   : > { %v1334_v57 = vpop.f32.mrf.mxu0 }
 0x965   : > { %v1335_v58 = vadd.f32 %v1619_v56, %v1334_v57 }
 0x966   : > { %v1736_v59 = vpop.f32.mrf.mxu0 }
 0x967   : > { %v1340_v60 = vmax.f32 %v1335_v58, 0.0 }
 0x968   : > { %v1337_v61 = vpop.f32.mrf.mxu0 }
 0x969   : > { %v1341_v62 = vpack.c.bf16 %v1340_v60, %v1340_v60 }
 0x96a   : > { %v1737_v63 = vpop.f32.mrf.mxu0 }
 0x96b   : > { %1747 = vmatmul.mubr.msk.bf16.vlgmr.msra.gmra.mxu1 %vm1381_vm13, %v1341_v62 }
 0xa2b   : > { %v1419_v1 = vpop.f32.mrf.mxu1 }
 0xa2c   : > { %v1420_v2 = vadd.f32 %v1623_v8, %v1419_v1 }
 0xa2d   : > { %v1748_v3 = vpop.f32.mrf.mxu1 }
 0xa2e   : > { %v1425_v4 = vadd.f32 %v1420_v2, %v2564_v27 }
 0xa2f   : > { %v1422_v5 = vpop.f32.mrf.mxu1 }
 0xa30   : > { %1426 = vst.msk [vmem:[%s567_s7] sm:$0xff] %vm576_vm0, %v1425_v4 }
 0xa31   : > { %v1749_v6 = vpop.f32.mrf.mxu1 }
 0xa32   : > { %2104 = shalt.err (!%p2101_p3)
}
 0xa33   : > { %s2105_s21 = scalar_lea.hbm %s2605_s18, 128  ;;  %s2109_s14 = scalar_lea.hbm %s2702_s23, 256 }
 0xa34   : > { %p2106_p6 = scmp.ne.s32.totalorder %s2605_s18, %s2105_s21  ;;  %p2110_p10 = scmp.lt.s32.totalorder %s2605_s18, %s2702_s23 }
 0xa35   : > { %p2111_p13 = scmp.lt.s32.totalorder %s2109_s14, %s2105_s21 }
 0xa36   : > { %p2107_p4 = pnand %p2106_p6, %p2703_p5 }
 0xa37   : > { %p2112_p0 = por %p2111_p13, %p2110_p10 }
 0xa38   : > { %p2108_p9 = pneg %p2107_p4 }
 0xa3a   : > { %p2113_p2 = pnand %p2112_p0, %p2108_p9 }
 0xa3c   : > { %2116 = shalt.err (!%p2113_p2)
}
 0xa3d   : > { %1776 = dma.vmem_to_hbm [thread:$0]  (%p2703_p5), %s2607_s2, 128, %s2605_s18, %s1428_s19  }
 0xa3e PF: > { %s1453_s7 = sand.u32 1, %s2155_s29   ;;  %p2704_p8 = scmp.ne.s32.totalorder %s2692_s24, 0 }
 0xa3f   : > { %p2705_p7 = scmp.ge.s32.totalorder %s2167_s16, 2  ;;  %s1454_s15 = scalar_lea.sflag [#allocation5], %s1453_s7 }
 0xa41   : > { %p1802_p11 = pnand %p2705_p7, %p2704_p8 }
 0xa43   : > { %p1803_p12 = pneg %p1802_p11 }
 0xa45   : > { %2150 = dma.done.wait (%p1803_p12), %s1454_s15, 128  }
 0xa46   : > { %2152 = vsyncadd (%p1803_p12), %s1454_s15, 4294967168  ;;  %s2706_s20 = sld [smem:[#allocation21_spill]]  ;;  %p30_p1 = scmp.ge.s32.totalorder %s2376_s25, 4  }
 0xa47   : > { %s2707_s15 = sld [smem:[#allocation22_spill]]  ;;  %s2708_s29 = smov %s2159_s30 }
 0xa48   : > { %s2710_s16 = smov %s2376_s25  ;;  %32 = sbr.rel (!%p30_p1) target bundleno = 16 (0x10), region = 148 }
 0xa4c   : > { %s2709_s30 = smov %s2706_s20 }
 0xa4d   :  { %1459 = vsyncpa [#allocation4], 1 }
 0xa4e   :  { %1461 = vsyncpa [#allocation4 + $0x1], 1 }
 0xa4f   :  { %1462 = vsyncpa [#allocation7], 1 }
 0xa50   :  { %1463 = vsyncpa [#allocation10], 1 }
 0xa51   :  { %1464 = vsyncpa [#allocation13], 1 }
 0xa52   :  { %1465 = vsyncpa [#allocation5], 1 }
 0xa53   :  { %1467 = vsyncpa [#allocation5 + $0x1], 1 }

</bundles_post_ra>
